<compile_context>
chip_gen: v5e
topology: v5e:2x2
jax: 0.10.0
libtpu: 0.0.40
codegen_flags: <defaults>
</compile_context>

<pallas_src>
import functools

import jax
import jax.numpy as jnp
from jax import lax
from jax.experimental import pallas as pl
from jax.experimental.pallas import tpu as pltpu


def _round_up(n, m):
    return ((n + m - 1) // m) * m


def rnn_kernel(tok_ref, eproj_ref, whh_ref, wout_ref, bout_ref,
               out_ref, buf_ref, *, seq_len, batch):
    """ReLU-RNN with in-kernel embedding/input-projection gather.

    tok_ref:   (T*Bp, 1)  int32 token ids, time-major flattened
    eproj_ref: (Vp, Dp)   f32 table: emb @ W_ih^T + b_ih + b_hh (zero padded)
    whh_ref:   (Dp, Dp)   hidden->hidden weight, pre-transposed (matmul dtype)
    wout_ref:  (Dp, Vp)   output projection weight, pre-transposed
    bout_ref:  (1, Vp)    output projection bias (f32)
    out_ref:   (T*Bp, Vp) logits (f32), time-major
    buf_ref:   (T*Bp, Dp) scratch (matmul dtype): first holds the gathered
                          e-proj rows, then is overwritten in place with the
                          hidden-state history for the output projection.
    """
    tbp, dp = buf_ref.shape
    vp = eproj_ref.shape[0]

    # (1) Gather e-proj rows for every (t, b) with a one-hot matmul (exact row
    #     selection, one MXU op).  Replaces the old x @ W_ih stage and all the
    #     wrapper-side embedding-gather / transpose / pad / cast glue.
    lane = lax.broadcasted_iota(jnp.int32, (tbp, vp), 1)
    onehot = (lane == tok_ref[...]).astype(jnp.float32)
    buf_ref[...] = jnp.dot(onehot, eproj_ref[...],
                           preferred_element_type=jnp.float32
                           ).astype(buf_ref.dtype)

    # (2) Serial recurrence: only h @ W_hh + add + ReLU on the critical path;
    #     h lives in vregs (f32 fori_loop carry), the history row is written
    #     once per step for the post-loop projection.
    def step(t, h_prev):
        row = pl.multiple_of(t * batch, batch)            # tile-aligned slice
        pre = buf_ref[pl.ds(row, batch), :].astype(jnp.float32) + jnp.dot(
            h_prev.astype(whh_ref.dtype), whh_ref[...],
            preferred_element_type=jnp.float32)
        h = jnp.maximum(pre, 0.0)                         # ReLU nonlinearity
        buf_ref[pl.ds(row, batch), :] = h.astype(buf_ref.dtype)
        return h

    h0 = jnp.zeros((batch, dp), jnp.float32)
    lax.fori_loop(0, seq_len, step, h0, unroll=True)      # short static T

    # (3) Hoisted output projection: one (T*Bp, Dp) x (Dp, Vp) matmul and one
    #     lane-dense bulk store.  No cast: buf already holds matmul dtype.
    out_ref[...] = (jnp.dot(buf_ref[...], wout_ref[...],
                            preferred_element_type=jnp.float32)
                    + bout_ref[...])


@functools.partial(jax.jit, static_argnames=("matmul_dtype",))
def simple_rnn_forward(tokens, emb, w_ih, w_hh, b_ih, b_hh, w_lin, b_lin,
                       matmul_dtype=jnp.bfloat16):
    """tokens: (B, T) int32.  Returns logits (B, T, V) float32."""
    B, T = tokens.shape
    D = emb.shape[1]
    V = w_lin.shape[0]

    itemsize = jnp.dtype(matmul_dtype).itemsize
    sublane_pack = 8 * (4 // itemsize)        # 8 rows f32, 16 rows bf16

    # Lane/sublane-dense padded sizes (zero padding keeps semantics exact).
    Dp = _round_up(D, 128)
    Vp = _round_up(V, 128)
    Bp = _round_up(B, sublane_pack)           # full scratch tiles per step
    TBp = T * Bp

    # Fold embedding + input projection + both biases into one small table:
    #   e_t @ W_ih^T + b_ih + b_hh == onehot(x_t) @ (E @ W_ih^T + b_ih + b_hh)
    eproj = emb @ w_ih.T + b_ih + b_hh                        # (V, D) f32
    eproj_p = jnp.pad(eproj, ((0, Vp - V), (0, Dp - D))).astype(jnp.float32)

    # Token ids, time-major flattened (tiny int32 transpose, not (B,T,D) data).
    tokens_p = jnp.pad(tokens, ((0, Bp - B), (0, 0)))          # (Bp, T)
    tok_tm = jnp.transpose(tokens_p).reshape(TBp, 1).astype(jnp.int32)

    # Pre-transpose + pad weights so the kernel does plain row-major x @ W.
    whh_t = jnp.pad(w_hh.T, ((0, Dp - D), (0, Dp - D))).astype(matmul_dtype)
    wout_t = jnp.pad(w_lin.T, ((0, Dp - D), (0, Vp - V))).astype(matmul_dtype)
    bout = jnp.pad(b_lin, (0, Vp - V)).reshape(1, Vp).astype(jnp.float32)

    flops = (2 * TBp * Vp * Dp          # one-hot gather matmul
             + 2 * T * Bp * Dp * Dp     # recurrence
             + 2 * TBp * Dp * Vp)       # output projection
    bytes_accessed = (tok_tm.size * 4 + eproj_p.size * 4
                      + (whh_t.size + wout_t.size) * itemsize
                      + bout.size * 4 + TBp * Vp * 4)

    kernel = functools.partial(rnn_kernel, seq_len=T, batch=Bp)
    out_flat = pl.pallas_call(
        kernel,
        out_shape=jax.ShapeDtypeStruct((TBp, Vp), jnp.float32),
        in_specs=[
            pl.BlockSpec(memory_space=pltpu.MemorySpace.VMEM),  # token ids
            pl.BlockSpec(memory_space=pltpu.MemorySpace.VMEM),  # E_proj table
            pl.BlockSpec(memory_space=pltpu.MemorySpace.VMEM),  # W_hh^T
            pl.BlockSpec(memory_space=pltpu.MemorySpace.VMEM),  # W_lin^T
            pl.BlockSpec(memory_space=pltpu.MemorySpace.VMEM),  # b_lin
        ],
        out_specs=pl.BlockSpec(memory_space=pltpu.MemorySpace.VMEM),
        scratch_shapes=[pltpu.VMEM((TBp, Dp), matmul_dtype)],   # eproj / h hist
        cost_estimate=pl.CostEstimate(flops=flops, transcendentals=0,
                                      bytes_accessed=bytes_accessed),
    )(tok_tm, eproj_p, whh_t, wout_t, bout)

    out = out_flat.reshape(T, Bp, Vp)            # (T, Bp, Vp)
    out = jnp.transpose(out, (1, 0, 2))          # (Bp, T, Vp)
    return out[:B, :, :V]                        # (B, T, V)


def reference_forward(tokens, emb, w_ih, w_hh, b_ih, b_hh, w_lin, b_lin):
    """Pure-JAX reference matching torch semantics (sanity check)."""
    x = emb[tokens]                                      # (B, T, D)
    B, T, D = x.shape
    h0 = jnp.zeros((B, D), jnp.float32)

    def step(h, x_t):
        h_new = jax.nn.relu(x_t @ w_ih.T + b_ih + h @ w_hh.T + b_hh)
        return h_new, h_new

    _, hs = lax.scan(step, h0, jnp.transpose(x, (1, 0, 2)))  # (T, B, D)
    hs = jnp.transpose(hs, (1, 0, 2))                        # (B, T, D)
    return hs @ w_lin.T + b_lin


if __name__ == "__main__":
    # Small shapes consistent with the module (embedding -> ReLU RNN -> linear).
    B, T = 2, 8          # batch, sequence length
    D = 50               # d_model (as in the spec)
    V = 65               # vocab_size (char-level)

    key = jax.random.PRNGKey(0)
    k_tok, k_emb, k_wih, k_whh, k_bih, k_bhh, k_wlin, k_blin = jax.random.split(key, 8)

    tokens = jax.random.randint(k_tok, (B, T), 0, V, dtype=jnp.int32)

    # Deterministic parameter init (matching PyTorch default init schemes).
    emb = jax.random.normal(k_emb, (V, D), jnp.float32)          # nn.Embedding ~ N(0,1)
    bound = 1.0 / (D ** 0.5)                                     # RNN / Linear ~ U(-1/sqrt(H), 1/sqrt(H))
    w_ih = jax.random.uniform(k_wih, (D, D), jnp.float32, -bound, bound)
    w_hh = jax.random.uniform(k_whh, (D, D), jnp.float32, -bound, bound)
    b_ih = jax.random.uniform(k_bih, (D,), jnp.float32, -bound, bound)
    b_hh = jax.random.uniform(k_bhh, (D,), jnp.float32, -bound, bound)
    w_lin = jax.random.uniform(k_wlin, (V, D), jnp.float32, -bound, bound)
    b_lin = jax.random.uniform(k_blin, (V,), jnp.float32, -bound, bound)

    ref = reference_forward(tokens, emb, w_ih, w_hh, b_ih, b_hh, w_lin, b_lin)

    # f32 MXU path: tight check against the reference.
    out_f32 = jax.block_until_ready(
        simple_rnn_forward(tokens, emb, w_ih, w_hh, b_ih, b_hh, w_lin, b_lin,
                           matmul_dtype=jnp.float32))
    assert out_f32.shape == (B, T, V)
    assert jnp.allclose(out_f32, ref, atol=1e-4, rtol=1e-4), "f32 mismatch vs reference"

    # bf16 MXU operands / bf16 history (f32 accumulation): looser tolerance.
    out_bf16 = jax.block_until_ready(
        simple_rnn_forward(tokens, emb, w_ih, w_hh, b_ih, b_hh, w_lin, b_lin,
                           matmul_dtype=jnp.bfloat16))
    assert out_bf16.shape == (B, T, V)
    assert jnp.allclose(out_bf16, ref, atol=1e-1, rtol=1e-1), "bf16 mismatch vs reference"

    print("KERNEL_OK")
</pallas_src>

<mosaic_0001>
module attributes {stable_mosaic.version = 11 : i64} {
  func.func @rnn_kernel(%arg0: memref<64x1xi32, #tpu.memory_space<vmem>>, %arg1: memref<128x128xf32, #tpu.memory_space<vmem>>, %arg2: memref<128x128xf32, #tpu.memory_space<vmem>>, %arg3: memref<128x128xf32, #tpu.memory_space<vmem>>, %arg4: memref<1x128xf32, #tpu.memory_space<vmem>>, %arg5: memref<64x128xf32, #tpu.memory_space<vmem>>, %arg6: memref<64x128xf32, #tpu.memory_space<vmem>>) attributes {dimension_semantics = [], scalar_prefetch = 0 : i64, scratch_operands = 1 : i64, tpu.core_type = #tpu.core_type<tc>} {
    %0 = tpu.iota {dimensions = array<i32: 1>} : vector<64x128xi32>
    %c0 = arith.constant 0 : index
    %c0_0 = arith.constant 0 : index
    %1 = vector.load %arg0[%c0, %c0_0] : memref<64x1xi32, #tpu.memory_space<vmem>>, vector<64x1xi32>
    %2 = vector.broadcast %1 : vector<64x1xi32> to vector<64x128xi32>
    %3 = arith.cmpi eq, %0, %2 : vector<64x128xi32>
    %4 = arith.extui %3 : vector<64x128xi1> to vector<64x128xi32>
    %5 = arith.sitofp %4 : vector<64x128xi32> to vector<64x128xf32>
    %c0_1 = arith.constant 0 : index
    %c0_2 = arith.constant 0 : index
    %6 = vector.load %arg1[%c0_1, %c0_2] : memref<128x128xf32, #tpu.memory_space<vmem>>, vector<128x128xf32>
    %cst = arith.constant dense<0.000000e+00> : vector<64x128xf32>
    %7 = tpu.matmul %5, %6, %cst {dimension_numbers = #tpu.dot_dimension_numbers<[1], [0], [0], [1], [0, 0, 1, 1], [], []>} : vector<64x128xf32>, vector<128x128xf32>, vector<64x128xf32> -> vector<64x128xf32>
    %c0_3 = arith.constant 0 : index
    %c0_4 = arith.constant 0 : index
    %8 = vector.load %arg6[%c0_3, %c0_4] : memref<64x128xf32, #tpu.memory_space<vmem>>, vector<64x128xf32>
    tpu.vector_store %arg6[%c0_3, %c0_4], %7 {strides = array<i32>} : memref<64x128xf32, #tpu.memory_space<vmem>>, vector<64x128xf32>,
    %cst_5 = arith.constant 0.000000e+00 : f32
    %9 = vector.broadcast %cst_5 : f32 to vector<8x128xf32>
    %c0_i32 = arith.constant 0 : i32
    %c8_i32 = arith.constant 8 : i32
    %10 = arith.muli %c0_i32, %c8_i32 : i32
    %11 = tpu.assume_multiple %10, 8 : i32
    %12 = arith.index_cast %11 : i32 to index
    %c0_6 = arith.constant 0 : index
    %13 = vector.load %arg6[%12, %c0_6] : memref<64x128xf32, #tpu.memory_space<vmem>>, vector<8x128xf32>
    %c0_7 = arith.constant 0 : index
    %c0_8 = arith.constant 0 : index
    %14 = vector.load %arg2[%c0_7, %c0_8] : memref<128x128xf32, #tpu.memory_space<vmem>>, vector<128x128xf32>
    %cst_9 = arith.constant dense<0.000000e+00> : vector<8x128xf32>
    %15 = tpu.matmul %9, %14, %cst_9 {dimension_numbers = #tpu.dot_dimension_numbers<[1], [0], [0], [1], [0, 0, 1, 1], [], []>} : vector<8x128xf32>, vector<128x128xf32>, vector<8x128xf32> -> vector<8x128xf32>
    %16 = arith.addf %13, %15 : vector<8x128xf32>
    %cst_10 = arith.constant 0.000000e+00 : f32
    %17 = vector.broadcast %cst_10 : f32 to vector<8x128xf32>
    %18 = arith.maximumf %16, %17 : vector<8x128xf32>
    %19 = arith.index_cast %11 : i32 to index
    %c0_11 = arith.constant 0 : index
    %20 = vector.load %arg6[%19, %c0_11] : memref<64x128xf32, #tpu.memory_space<vmem>>, vector<8x128xf32>
    tpu.vector_store %arg6[%19, %c0_11], %18 {strides = array<i32>} : memref<64x128xf32, #tpu.memory_space<vmem>>, vector<8x128xf32>,
    %c1_i32 = arith.constant 1 : i32
    %c8_i32_12 = arith.constant 8 : i32
    %21 = arith.muli %c1_i32, %c8_i32_12 : i32
    %22 = tpu.assume_multiple %21, 8 : i32
    %23 = arith.index_cast %22 : i32 to index
    %c0_13 = arith.constant 0 : index
    %24 = vector.load %arg6[%23, %c0_13] : memref<64x128xf32, #tpu.memory_space<vmem>>, vector<8x128xf32>
    %c0_14 = arith.constant 0 : index
    %c0_15 = arith.constant 0 : index
    %25 = vector.load %arg2[%c0_14, %c0_15] : memref<128x128xf32, #tpu.memory_space<vmem>>, vector<128x128xf32>
    %cst_16 = arith.constant dense<0.000000e+00> : vector<8x128xf32>
    %26 = tpu.matmul %18, %25, %cst_16 {dimension_numbers = #tpu.dot_dimension_numbers<[1], [0], [0], [1], [0, 0, 1, 1], [], []>} : vector<8x128xf32>, vector<128x128xf32>, vector<8x128xf32> -> vector<8x128xf32>
    %27 = arith.addf %24, %26 : vector<8x128xf32>
    %cst_17 = arith.constant 0.000000e+00 : f32
    %28 = vector.broadcast %cst_17 : f32 to vector<8x128xf32>
    %29 = arith.maximumf %27, %28 : vector<8x128xf32>
    %30 = arith.index_cast %22 : i32 to index
    %c0_18 = arith.constant 0 : index
    %31 = vector.load %arg6[%30, %c0_18] : memref<64x128xf32, #tpu.memory_space<vmem>>, vector<8x128xf32>
    tpu.vector_store %arg6[%30, %c0_18], %29 {strides = array<i32>} : memref<64x128xf32, #tpu.memory_space<vmem>>, vector<8x128xf32>,
    %c2_i32 = arith.constant 2 : i32
    %c8_i32_19 = arith.constant 8 : i32
    %32 = arith.muli %c2_i32, %c8_i32_19 : i32
    %33 = tpu.assume_multiple %32, 8 : i32
    %34 = arith.index_cast %33 : i32 to index
    %c0_20 = arith.constant 0 : index
    %35 = vector.load %arg6[%34, %c0_20] : memref<64x128xf32, #tpu.memory_space<vmem>>, vector<8x128xf32>
    %c0_21 = arith.constant 0 : index
    %c0_22 = arith.constant 0 : index
    %36 = vector.load %arg2[%c0_21, %c0_22] : memref<128x128xf32, #tpu.memory_space<vmem>>, vector<128x128xf32>
    %cst_23 = arith.constant dense<0.000000e+00> : vector<8x128xf32>
    %37 = tpu.matmul %29, %36, %cst_23 {dimension_numbers = #tpu.dot_dimension_numbers<[1], [0], [0], [1], [0, 0, 1, 1], [], []>} : vector<8x128xf32>, vector<128x128xf32>, vector<8x128xf32> -> vector<8x128xf32>
    %38 = arith.addf %35, %37 : vector<8x128xf32>
    %cst_24 = arith.constant 0.000000e+00 : f32
    %39 = vector.broadcast %cst_24 : f32 to vector<8x128xf32>
    %40 = arith.maximumf %38, %39 : vector<8x128xf32>
    %41 = arith.index_cast %33 : i32 to index
    %c0_25 = arith.constant 0 : index
    %42 = vector.load %arg6[%41, %c0_25] : memref<64x128xf32, #tpu.memory_space<vmem>>, vector<8x128xf32>
    tpu.vector_store %arg6[%41, %c0_25], %40 {strides = array<i32>} : memref<64x128xf32, #tpu.memory_space<vmem>>, vector<8x128xf32>,
    %c3_i32 = arith.constant 3 : i32
    %c8_i32_26 = arith.constant 8 : i32
    %43 = arith.muli %c3_i32, %c8_i32_26 : i32
    %44 = tpu.assume_multiple %43, 8 : i32
    %45 = arith.index_cast %44 : i32 to index
    %c0_27 = arith.constant 0 : index
    %46 = vector.load %arg6[%45, %c0_27] : memref<64x128xf32, #tpu.memory_space<vmem>>, vector<8x128xf32>
    %c0_28 = arith.constant 0 : index
    %c0_29 = arith.constant 0 : index
    %47 = vector.load %arg2[%c0_28, %c0_29] : memref<128x128xf32, #tpu.memory_space<vmem>>, vector<128x128xf32>
    %cst_30 = arith.constant dense<0.000000e+00> : vector<8x128xf32>
    %48 = tpu.matmul %40, %47, %cst_30 {dimension_numbers = #tpu.dot_dimension_numbers<[1], [0], [0], [1], [0, 0, 1, 1], [], []>} : vector<8x128xf32>, vector<128x128xf32>, vector<8x128xf32> -> vector<8x128xf32>
    %49 = arith.addf %46, %48 : vector<8x128xf32>
    %cst_31 = arith.constant 0.000000e+00 : f32
    %50 = vector.broadcast %cst_31 : f32 to vector<8x128xf32>
    %51 = arith.maximumf %49, %50 : vector<8x128xf32>
    %52 = arith.index_cast %44 : i32 to index
    %c0_32 = arith.constant 0 : index
    %53 = vector.load %arg6[%52, %c0_32] : memref<64x128xf32, #tpu.memory_space<vmem>>, vector<8x128xf32>
    tpu.vector_store %arg6[%52, %c0_32], %51 {strides = array<i32>} : memref<64x128xf32, #tpu.memory_space<vmem>>, vector<8x128xf32>,
    %c4_i32 = arith.constant 4 : i32
    %c8_i32_33 = arith.constant 8 : i32
    %54 = arith.muli %c4_i32, %c8_i32_33 : i32
    %55 = tpu.assume_multiple %54, 8 : i32
    %56 = arith.index_cast %55 : i32 to index
    %c0_34 = arith.constant 0 : index
    %57 = vector.load %arg6[%56, %c0_34] : memref<64x128xf32, #tpu.memory_space<vmem>>, vector<8x128xf32>
    %c0_35 = arith.constant 0 : index
    %c0_36 = arith.constant 0 : index
    %58 = vector.load %arg2[%c0_35, %c0_36] : memref<128x128xf32, #tpu.memory_space<vmem>>, vector<128x128xf32>
    %cst_37 = arith.constant dense<0.000000e+00> : vector<8x128xf32>
    %59 = tpu.matmul %51, %58, %cst_37 {dimension_numbers = #tpu.dot_dimension_numbers<[1], [0], [0], [1], [0, 0, 1, 1], [], []>} : vector<8x128xf32>, vector<128x128xf32>, vector<8x128xf32> -> vector<8x128xf32>
    %60 = arith.addf %57, %59 : vector<8x128xf32>
    %cst_38 = arith.constant 0.000000e+00 : f32
    %61 = vector.broadcast %cst_38 : f32 to vector<8x128xf32>
    %62 = arith.maximumf %60, %61 : vector<8x128xf32>
    %63 = arith.index_cast %55 : i32 to index
    %c0_39 = arith.constant 0 : index
    %64 = vector.load %arg6[%63, %c0_39] : memref<64x128xf32, #tpu.memory_space<vmem>>, vector<8x128xf32>
    tpu.vector_store %arg6[%63, %c0_39], %62 {strides = array<i32>} : memref<64x128xf32, #tpu.memory_space<vmem>>, vector<8x128xf32>,
    %c5_i32 = arith.constant 5 : i32
    %c8_i32_40 = arith.constant 8 : i32
    %65 = arith.muli %c5_i32, %c8_i32_40 : i32
    %66 = tpu.assume_multiple %65, 8 : i32
    %67 = arith.index_cast %66 : i32 to index
    %c0_41 = arith.constant 0 : index
    %68 = vector.load %arg6[%67, %c0_41] : memref<64x128xf32, #tpu.memory_space<vmem>>, vector<8x128xf32>
    %c0_42 = arith.constant 0 : index
    %c0_43 = arith.constant 0 : index
    %69 = vector.load %arg2[%c0_42, %c0_43] : memref<128x128xf32, #tpu.memory_space<vmem>>, vector<128x128xf32>
    %cst_44 = arith.constant dense<0.000000e+00> : vector<8x128xf32>
    %70 = tpu.matmul %62, %69, %cst_44 {dimension_numbers = #tpu.dot_dimension_numbers<[1], [0], [0], [1], [0, 0, 1, 1], [], []>} : vector<8x128xf32>, vector<128x128xf32>, vector<8x128xf32> -> vector<8x128xf32>
    %71 = arith.addf %68, %70 : vector<8x128xf32>
    %cst_45 = arith.constant 0.000000e+00 : f32
    %72 = vector.broadcast %cst_45 : f32 to vector<8x128xf32>
    %73 = arith.maximumf %71, %72 : vector<8x128xf32>
    %74 = arith.index_cast %66 : i32 to index
    %c0_46 = arith.constant 0 : index
    %75 = vector.load %arg6[%74, %c0_46] : memref<64x128xf32, #tpu.memory_space<vmem>>, vector<8x128xf32>
    tpu.vector_store %arg6[%74, %c0_46], %73 {strides = array<i32>} : memref<64x128xf32, #tpu.memory_space<vmem>>, vector<8x128xf32>,
    %c6_i32 = arith.constant 6 : i32
    %c8_i32_47 = arith.constant 8 : i32
    %76 = arith.muli %c6_i32, %c8_i32_47 : i32
    %77 = tpu.assume_multiple %76, 8 : i32
    %78 = arith.index_cast %77 : i32 to index
    %c0_48 = arith.constant 0 : index
    %79 = vector.load %arg6[%78, %c0_48] : memref<64x128xf32, #tpu.memory_space<vmem>>, vector<8x128xf32>
    %c0_49 = arith.constant 0 : index
    %c0_50 = arith.constant 0 : index
    %80 = vector.load %arg2[%c0_49, %c0_50] : memref<128x128xf32, #tpu.memory_space<vmem>>, vector<128x128xf32>
    %cst_51 = arith.constant dense<0.000000e+00> : vector<8x128xf32>
    %81 = tpu.matmul %73, %80, %cst_51 {dimension_numbers = #tpu.dot_dimension_numbers<[1], [0], [0], [1], [0, 0, 1, 1], [], []>} : vector<8x128xf32>, vector<128x128xf32>, vector<8x128xf32> -> vector<8x128xf32>
    %82 = arith.addf %79, %81 : vector<8x128xf32>
    %cst_52 = arith.constant 0.000000e+00 : f32
    %83 = vector.broadcast %cst_52 : f32 to vector<8x128xf32>
    %84 = arith.maximumf %82, %83 : vector<8x128xf32>
    %85 = arith.index_cast %77 : i32 to index
    %c0_53 = arith.constant 0 : index
    %86 = vector.load %arg6[%85, %c0_53] : memref<64x128xf32, #tpu.memory_space<vmem>>, vector<8x128xf32>
    tpu.vector_store %arg6[%85, %c0_53], %84 {strides = array<i32>} : memref<64x128xf32, #tpu.memory_space<vmem>>, vector<8x128xf32>,
    %c7_i32 = arith.constant 7 : i32
    %c8_i32_54 = arith.constant 8 : i32
    %87 = arith.muli %c7_i32, %c8_i32_54 : i32
    %88 = tpu.assume_multiple %87, 8 : i32
    %89 = arith.index_cast %88 : i32 to index
    %c0_55 = arith.constant 0 : index
    %90 = vector.load %arg6[%89, %c0_55] : memref<64x128xf32, #tpu.memory_space<vmem>>, vector<8x128xf32>
    %c0_56 = arith.constant 0 : index
    %c0_57 = arith.constant 0 : index
    %91 = vector.load %arg2[%c0_56, %c0_57] : memref<128x128xf32, #tpu.memory_space<vmem>>, vector<128x128xf32>
    %cst_58 = arith.constant dense<0.000000e+00> : vector<8x128xf32>
    %92 = tpu.matmul %84, %91, %cst_58 {dimension_numbers = #tpu.dot_dimension_numbers<[1], [0], [0], [1], [0, 0, 1, 1], [], []>} : vector<8x128xf32>, vector<128x128xf32>, vector<8x128xf32> -> vector<8x128xf32>
    %93 = arith.addf %90, %92 : vector<8x128xf32>
    %cst_59 = arith.constant 0.000000e+00 : f32
    %94 = vector.broadcast %cst_59 : f32 to vector<8x128xf32>
    %95 = arith.maximumf %93, %94 : vector<8x128xf32>
    %96 = arith.index_cast %88 : i32 to index
    %c0_60 = arith.constant 0 : index
    %97 = vector.load %arg6[%96, %c0_60] : memref<64x128xf32, #tpu.memory_space<vmem>>, vector<8x128xf32>
    tpu.vector_store %arg6[%96, %c0_60], %95 {strides = array<i32>} : memref<64x128xf32, #tpu.memory_space<vmem>>, vector<8x128xf32>,
    %c8_i32_61 = arith.constant 8 : i32
    %c0_62 = arith.constant 0 : index
    %c0_63 = arith.constant 0 : index
    %98 = vector.load %arg6[%c0_62, %c0_63] : memref<64x128xf32, #tpu.memory_space<vmem>>, vector<64x128xf32>
    %c0_64 = arith.constant 0 : index
    %c0_65 = arith.constant 0 : index
    %99 = vector.load %arg3[%c0_64, %c0_65] : memref<128x128xf32, #tpu.memory_space<vmem>>, vector<128x128xf32>
    %cst_66 = arith.constant dense<0.000000e+00> : vector<64x128xf32>
    %100 = tpu.matmul %98, %99, %cst_66 {dimension_numbers = #tpu.dot_dimension_numbers<[1], [0], [0], [1], [0, 0, 1, 1], [], []>} : vector<64x128xf32>, vector<128x128xf32>, vector<64x128xf32> -> vector<64x128xf32>
    %c0_67 = arith.constant 0 : index
    %c0_68 = arith.constant 0 : index
    %101 = vector.load %arg4[%c0_67, %c0_68] : memref<1x128xf32, #tpu.memory_space<vmem>>, vector<1x128xf32>
    %102 = vector.broadcast %101 : vector<1x128xf32> to vector<64x128xf32>
    %103 = arith.addf %100, %102 : vector<64x128xf32>
    %c0_69 = arith.constant 0 : index
    %c0_70 = arith.constant 0 : index
    %104 = vector.load %arg5[%c0_69, %c0_70] : memref<64x128xf32, #tpu.memory_space<vmem>>, vector<64x128xf32>
    tpu.vector_store %arg5[%c0_69, %c0_70], %103 {strides = array<i32>} : memref<64x128xf32, #tpu.memory_space<vmem>>, vector<64x128xf32>,
    return
  }
}

</mosaic_0001>

<bundles_post_ra>
// kernel: simple_rnn_forward.1
= control target key start
LH: loop header
LB: loop body
LE: loop exit
PB: predicated region body
PF: predicated region fallthrough
CT: control target
= control target key end

     0   :  { %v574_v0 = vmov 0   ;;  %v575_v40 = vmov 0.0   ;;  %v20_v41 = vlaneseq  ;;  %v576_v44 = vmov 1.0   ;;  %s979_s0 = inlined_call_operand.vmem [shape: s32[64,1], index: 0, kind: input, shape index: {}]   ;;  %s980_s1 = inlined_call_operand.vmem [shape: f32[128,128], index: 1, kind: input, shape index: {}]   ;;  %s981_s2 = inlined_call_operand.vmem [shape: f32[128,128], index: 2, kind: input, shape index: {}]   ;;  %s982_s3 = inlined_call_operand.vmem [shape: f32[128,128], index: 3, kind: input, shape index: {}]   ;;  %s983_s4 = inlined_call_operand.vmem [shape: f32[1,128], index: 4, kind: input, shape index: {}]   ;;  %s984_s5 = inlined_call_operand.vmem [shape: f32[64,128], index: 5, kind: output, shape index: {}]  }
   0x1   :  { %570 = vset.pattern.permute.xlu0 %v574_v0  ;;  %v22_v1 = vld [vmem:[%s979_s0] sm:$0xff]  ;;  %571 = vset.pattern.permute.xlu1 %v574_v0  ;;  %v24_v2 = vld [vmem:[%s979_s0 + $0x10] sm:$0xff]  ;;  %v93_v4 = vld [vmem:[%s980_s1 + $0x78] sm:$0xff] }
   0x2   :  { %31 = vperm.xlu0 %570, %v22_v1   ;;  %37 = vperm.xlu1 %571, %v24_v2   ;;  %v26_v3 = vld [vmem:[%s979_s0 + $0x20] sm:$0xff]  ;;  %v622_v5 = vld [vmem:[%s981_s2 + $0x78] sm:$0xff]  ;;  %v92_v6 = vld [vmem:[%s980_s1 + $0x70] sm:$0xff]  ;;  %v843_v42 = vand.u32 127, %v20_v41 }
   0x3   :  { %572 = vset.pattern.permute.xlu2 %v574_v0  ;;  %94 = vmatpush.msra.mxu0 %v93_v4  ;;  %v630_v7 = vld [vmem:[%s981_s2 + $0x70] sm:$0xff]  ;;  %v91_v8 = vld [vmem:[%s980_s1 + $0x68] sm:$0xff]  ;;  %v25_v11 = vld [vmem:[%s979_s0 + $0x18] sm:$0xff] }
   0x4   :  { %43 = vperm.xlu2 %572, %v26_v3   ;;  %160 = vmatpush.msra.mxu1 %v622_v5  ;;  %v640_v9 = vld [vmem:[%s981_s2 + $0x68] sm:$0xff]  ;;  %v90_v12 = vld [vmem:[%s980_s1 + $0x60] sm:$0xff]  ;;  %v89_v15 = vld [vmem:[%s980_s1 + $0x58] sm:$0xff] }
   0x5   :  { %201 = vmatpush.msra.mxu3 %v622_v5  ;;  %95 = vmatpush.msra.mxu0 %v92_v6  ;;  %v23_v10 = vld [vmem:[%s979_s0 + $0x8] sm:$0xff]  ;;  %v657_v13 = vld [vmem:[%s981_s2 + $0x60] sm:$0xff]  ;;  %v671_v16 = vld [vmem:[%s981_s2 + $0x58] sm:$0xff] }
   0x6   :  { %324 = vmatpush.msra.mxu2 %v622_v5  ;;  %161 = vmatpush.msra.mxu1 %v630_v7  ;;  %v27_v14 = vld [vmem:[%s979_s0 + $0x28] sm:$0xff]  ;;  %v88_v17 = vld [vmem:[%s980_s1 + $0x50] sm:$0xff]  ;;  %v86_v22 = vld [vmem:[%s980_s1 + $0x40] sm:$0xff] }
   0x7   :  { %202 = vmatpush.msra.mxu3 %v630_v7  ;;  %96 = vmatpush.msra.mxu0 %v91_v8  ;;  %v680_v18 = vld [vmem:[%s981_s2 + $0x50] sm:$0xff]  ;;  %v87_v19 = vld [vmem:[%s980_s1 + $0x48] sm:$0xff]  ;;  %v704_v23 = vld [vmem:[%s981_s2 + $0x40] sm:$0xff] }
   0x8   :  { %325 = vmatpush.msra.mxu2 %v630_v7  ;;  %162 = vmatpush.msra.mxu1 %v640_v9  ;;  %v690_v20 = vld [vmem:[%s981_s2 + $0x48] sm:$0xff]  ;;  %v28_v21 = vld [vmem:[%s979_s0 + $0x30] sm:$0xff]  ;;  %v85_v24 = vld [vmem:[%s980_s1 + $0x38] sm:$0xff] }
   0x9   :  { %203 = vmatpush.msra.mxu3 %v640_v9  ;;  %97 = vmatpush.msra.mxu0 %v90_v12  ;;  %v715_v25 = vld [vmem:[%s981_s2 + $0x38] sm:$0xff]  ;;  %v84_v26 = vld [vmem:[%s980_s1 + $0x30] sm:$0xff]  ;;  %v83_v28 = vld [vmem:[%s980_s1 + $0x28] sm:$0xff] }
   0xa   :  { %34 = vperm.xlu0 %570, %v23_v10   ;;  %40 = vperm.xlu1 %571, %v25_v11   ;;  %v725_v27 = vld [vmem:[%s981_s2 + $0x30] sm:$0xff]  ;;  %v736_v29 = vld [vmem:[%s981_s2 + $0x28] sm:$0xff]  ;;  %v82_v30 = vld [vmem:[%s980_s1 + $0x20] sm:$0xff] }
   0xb   :  { %163 = vmatpush.msra.mxu1 %v657_v13  ;;  %204 = vmatpush.msra.mxu3 %v657_v13  ;;  %v747_v31 = vld [vmem:[%s981_s2 + $0x20] sm:$0xff]  ;;  %v81_v32 = vld [vmem:[%s980_s1 + $0x18] sm:$0xff]  ;;  %v80_v34 = vld [vmem:[%s980_s1 + $0x10] sm:$0xff] }
   0xc   :  { %46 = vperm.xlu2 %572, %v27_v14   ;;  %98 = vmatpush.msra.mxu0 %v89_v15  ;;  %v758_v33 = vld [vmem:[%s981_s2 + $0x18] sm:$0xff]  ;;  %v769_v35 = vld [vmem:[%s981_s2 + $0x10] sm:$0xff]  ;;  %v79_v36 = vld [vmem:[%s980_s1 + $0x8] sm:$0xff] }
   0xd   :  { %164 = vmatpush.msra.mxu1 %v671_v16  ;;  %205 = vmatpush.msra.mxu3 %v671_v16  ;;  %v780_v37 = vld [vmem:[%s981_s2 + $0x8] sm:$0xff]  ;;  %v78_v38 = vld [vmem:[%s980_s1] sm:$0xff]  ;;  %v29_v51 = vld [vmem:[%s979_s0 + $0x38] sm:$0xff] }
   0xe   :  { %326 = vmatpush.msra.mxu2 %v640_v9  ;;  %99 = vmatpush.msra.mxu0 %v88_v17  ;;  %v799_v39 = vld [vmem:[%s981_s2] sm:$0xff]  ;;  %v493_v61 = vld [vmem:[%s982_s3 + $0x78] sm:$0xff]  ;;  %v492_v62 = vld [vmem:[%s982_s3 + $0x70] sm:$0xff] }
   0xf   :  { %165 = vmatpush.msra.mxu1 %v680_v18  ;;  %206 = vmatpush.msra.mxu3 %v680_v18  ;;  %v491_v63 = vld [vmem:[%s982_s3 + $0x68] sm:$0xff]  ;;  %v490_v0 = vld [vmem:[%s982_s3 + $0x60] sm:$0xff]  ;;  %v489_v1 = vld [vmem:[%s982_s3 + $0x58] sm:$0xff] }
  0x10   :  { %327 = vmatpush.msra.mxu2 %v657_v13  ;;  %100 = vmatpush.msra.mxu0 %v87_v19  ;;  %v488_v2 = vld [vmem:[%s982_s3 + $0x50] sm:$0xff]  ;;  %v487_v3 = vld [vmem:[%s982_s3 + $0x48] sm:$0xff]  ;;  %v486_v4 = vld [vmem:[%s982_s3 + $0x40] sm:$0xff] }
  0x11   :  { %166 = vmatpush.msra.mxu1 %v690_v20  ;;  %207 = vmatpush.msra.mxu3 %v690_v20  ;;  %v484_v10 = vld [vmem:[%s982_s3 + $0x30] sm:$0xff]  ;;  %v483_v11 = vld [vmem:[%s982_s3 + $0x28] sm:$0xff]  ;;  %v482_v12 = vld [vmem:[%s982_s3 + $0x20] sm:$0xff] }
  0x12   :  { %49 = vperm.xlu0 %570, %v28_v21   ;;  %101 = vmatpush.msra.mxu0 %v86_v22  ;;  %v480_v14 = vld [vmem:[%s982_s3 + $0x10] sm:$0xff]  ;;  %v479_v15 = vld [vmem:[%s982_s3 + $0x8] sm:$0xff] }
  0x13   :  { %167 = vmatpush.msra.mxu1 %v704_v23  ;;  %208 = vmatpush.msra.mxu3 %v704_v23 }
  0x14   :  { %328 = vmatpush.msra.mxu2 %v671_v16  ;;  %102 = vmatpush.msra.mxu0 %v85_v24 }
  0x15   :  { %168 = vmatpush.msra.mxu1 %v715_v25  ;;  %209 = vmatpush.msra.mxu3 %v715_v25 }
  0x16   :  { %329 = vmatpush.msra.mxu2 %v680_v18  ;;  %103 = vmatpush.msra.mxu0 %v84_v26 }
  0x17   :  { %169 = vmatpush.msra.mxu1 %v725_v27  ;;  %210 = vmatpush.msra.mxu3 %v725_v27 }
  0x18   :  { %330 = vmatpush.msra.mxu2 %v690_v20  ;;  %104 = vmatpush.msra.mxu0 %v83_v28 }
  0x19   :  { %170 = vmatpush.msra.mxu1 %v736_v29  ;;  %211 = vmatpush.msra.mxu3 %v736_v29 }
  0x1a   :  { %331 = vmatpush.msra.mxu2 %v704_v23  ;;  %105 = vmatpush.msra.mxu0 %v82_v30 }
  0x1b   :  { %171 = vmatpush.msra.mxu1 %v747_v31  ;;  %212 = vmatpush.msra.mxu3 %v747_v31 }
  0x1c   :  { %332 = vmatpush.msra.mxu2 %v715_v25  ;;  %106 = vmatpush.msra.mxu0 %v81_v32 }
  0x1d   :  { %172 = vmatpush.msra.mxu1 %v758_v33  ;;  %213 = vmatpush.msra.mxu3 %v758_v33 }
  0x1e   :  { %333 = vmatpush.msra.mxu2 %v725_v27  ;;  %107 = vmatpush.msra.mxu0 %v80_v34 }
  0x1f   :  { %173 = vmatpush.msra.mxu1 %v769_v35  ;;  %214 = vmatpush.msra.mxu3 %v769_v35 }
  0x20   :  { %334 = vmatpush.msra.mxu2 %v736_v29  ;;  %108 = vmatpush.msra.mxu0 %v79_v36 }
  0x21   :  { %174 = vmatpush.msra.mxu1 %v780_v37  ;;  %215 = vmatpush.msra.mxu3 %v780_v37 }
  0x22   :  { %335 = vmatpush.msra.mxu2 %v747_v31  ;;  %109 = vmatpush.msra.mxu0 %v78_v38 }
  0x23   :  { %175 = vmatpush.msra.mxu1 %v799_v39  ;;  %216 = vmatpush.msra.mxu3 %v799_v39 }
  0x24   :  { %336 = vmatpush.msra.mxu2 %v758_v33  ;;  %176 = vmatmul.f32.vlgmr.msra.gmra.mxu1 %v575_v40 }
  0x25   :  { %242 = vmatpush.msrb.mxu3 %v622_v5  ;;  %283 = vmatpush.msrb.mxu1 %v622_v5 }
  0x26   :  { %337 = vmatpush.msra.mxu2 %v769_v35  ;;  %406 = vmatpush.msrb.mxu0 %v622_v5 }
  0x27   :  { %243 = vmatpush.msrb.mxu3 %v630_v7  ;;  %284 = vmatpush.msrb.mxu1 %v630_v7 }
  0x28   :  { %338 = vmatpush.msra.mxu2 %v780_v37  ;;  %407 = vmatpush.msrb.mxu0 %v630_v7 }
  0x29   :  { %244 = vmatpush.msrb.mxu3 %v640_v9  ;;  %285 = vmatpush.msrb.mxu1 %v640_v9 }
  0x2a   :  { %339 = vmatpush.msra.mxu2 %v799_v39  ;;  %408 = vmatpush.msrb.mxu0 %v640_v9 }
  0x2b   :  { %245 = vmatpush.msrb.mxu3 %v657_v13  ;;  %286 = vmatpush.msrb.mxu1 %v657_v13 }
  0x2c   :  { %409 = vmatpush.msrb.mxu0 %v657_v13  ;;  %52 = vperm.xlu1 %571, %v29_v51  }
  0x2d   :  { %246 = vmatpush.msrb.mxu3 %v671_v16  ;;  %287 = vmatpush.msrb.mxu1 %v671_v16 }
  0x2e   :  { %410 = vmatpush.msrb.mxu0 %v671_v16  ;;  %498 = vmatpush.msrb.mxu2 %v493_v61 }
  0x2f   :  { %247 = vmatpush.msrb.mxu3 %v680_v18  ;;  %288 = vmatpush.msrb.mxu1 %v680_v18 }
  0x30   :  { %411 = vmatpush.msrb.mxu0 %v680_v18  ;;  %499 = vmatpush.msrb.mxu2 %v492_v62 }
  0x31   :  { %248 = vmatpush.msrb.mxu3 %v690_v20  ;;  %289 = vmatpush.msrb.mxu1 %v690_v20 }
  0x32   :  { %412 = vmatpush.msrb.mxu0 %v690_v20  ;;  %500 = vmatpush.msrb.mxu2 %v491_v63 }
  0x33   :  { %249 = vmatpush.msrb.mxu3 %v704_v23  ;;  %290 = vmatpush.msrb.mxu1 %v704_v23 }
  0x34   :  { %413 = vmatpush.msrb.mxu0 %v704_v23  ;;  %501 = vmatpush.msrb.mxu2 %v490_v0 }
  0x35   :  { %250 = vmatpush.msrb.mxu3 %v715_v25  ;;  %291 = vmatpush.msrb.mxu1 %v715_v25 }
  0x36   :  { %414 = vmatpush.msrb.mxu0 %v715_v25  ;;  %502 = vmatpush.msrb.mxu2 %v489_v1 }
  0x37   :  { %251 = vmatpush.msrb.mxu3 %v725_v27  ;;  %292 = vmatpush.msrb.mxu1 %v725_v27 }
  0x38   :  { %415 = vmatpush.msrb.mxu0 %v725_v27  ;;  %503 = vmatpush.msrb.mxu2 %v488_v2 }
  0x39   :  { %252 = vmatpush.msrb.mxu3 %v736_v29  ;;  %293 = vmatpush.msrb.mxu1 %v736_v29 }
  0x3a   :  { %416 = vmatpush.msrb.mxu0 %v736_v29  ;;  %504 = vmatpush.msrb.mxu2 %v487_v3 }
  0x3b   :  { %253 = vmatpush.msrb.mxu3 %v747_v31  ;;  %294 = vmatpush.msrb.mxu1 %v747_v31 }
  0x3c   :  { %417 = vmatpush.msrb.mxu0 %v747_v31  ;;  %505 = vmatpush.msrb.mxu2 %v486_v4 }
  0x3d   :  { %254 = vmatpush.msrb.mxu3 %v758_v33  ;;  %295 = vmatpush.msrb.mxu1 %v758_v33 }
  0x3e   :  { %418 = vmatpush.msrb.mxu0 %v758_v33 }
  0x3f   :  { %255 = vmatpush.msrb.mxu3 %v769_v35  ;;  %296 = vmatpush.msrb.mxu1 %v769_v35 }
  0x40   :  { %419 = vmatpush.msrb.mxu0 %v769_v35 }
  0x41   :  { %256 = vmatpush.msrb.mxu3 %v780_v37  ;;  %297 = vmatpush.msrb.mxu1 %v780_v37 }
  0x42   :  { %420 = vmatpush.msrb.mxu0 %v780_v37 }
  0x43   :  { %257 = vmatpush.msrb.mxu3 %v799_v39  ;;  %298 = vmatpush.msrb.mxu1 %v799_v39 }
  0x44   :  { %421 = vmatpush.msrb.mxu0 %v799_v39 }
  0x45   :  { %447 = vmatpush.msra.mxu1 %v622_v5 }
  0x47   :  { %448 = vmatpush.msra.mxu1 %v630_v7 }
  0x49   :  { %449 = vmatpush.msra.mxu1 %v640_v9 }
  0x4b   :  { %450 = vmatpush.msra.mxu1 %v657_v13 }
  0x4d   :  { %451 = vmatpush.msra.mxu1 %v671_v16 }
  0x4f   :  { %452 = vmatpush.msra.mxu1 %v680_v18 }
  0x51   :  { %453 = vmatpush.msra.mxu1 %v690_v20 }
  0x53   :  { %454 = vmatpush.msra.mxu1 %v704_v23 }
  0x55   :  { %455 = vmatpush.msra.mxu1 %v715_v25 }
  0x57   :  { %456 = vmatpush.msra.mxu1 %v725_v27 }
  0x59   :  { %457 = vmatpush.msra.mxu1 %v736_v29 }
  0x5b   :  { %458 = vmatpush.msra.mxu1 %v747_v31 }
  0x5d   :  { %459 = vmatpush.msra.mxu1 %v758_v33 }
  0x5e   :  { %v44_v48 = vpop.permute.xlu2 %43 }
  0x5f   :  { %460 = vmatpush.msra.mxu1 %v769_v35  ;;  %vm58_vm4 = vcmp.eq.s32.totalorder %v843_v42, %v44_v48 }
  0x61   :  { %461 = vmatpush.msra.mxu1 %v780_v37 }
  0x63   :  { %462 = vmatpush.msra.mxu1 %v799_v39 }
  0x66   :  { %v47_v49 = vpop.permute.xlu2 %46 }
  0x67   :  { %vm59_vm5 = vcmp.eq.s32.totalorder %v843_v42, %v47_v49 }
  0x74   :  { %v32_v43 = vpop.permute.xlu0 %31  ;;  %v38_v46 = vpop.permute.xlu1 %37 }
  0x75   :  { %vm54_vm0 = vcmp.eq.s32.totalorder %v843_v42, %v32_v43  ;;  %vm56_vm2 = vcmp.eq.s32.totalorder %v843_v42, %v38_v46 }
  0x76   :  { %559 = vmatmul.msk.f32.vlgmr.msra.gmra.mxu0 %vm54_vm0, %v576_v44 }
  0x7c   :  { %v35_v45 = vpop.permute.xlu0 %34  ;;  %v41_v47 = vpop.permute.xlu1 %40 }
  0x7d   :  { %vm55_vm1 = vcmp.eq.s32.totalorder %v843_v42, %v35_v45  ;;  %vm57_vm3 = vcmp.eq.s32.totalorder %v843_v42, %v41_v47 }
  0x7e   :  { %560 = vmatmul.msk.f32.gmra.mxu0 %vm55_vm1, %v576_v44 }
  0x84   :  { %v50_v50 = vpop.permute.xlu0 %49 }
  0x85   :  { %vm60_vm6 = vcmp.eq.s32.totalorder %v843_v42, %v50_v50 }
  0x86   :  { %561 = vmatmul.msk.f32.gmra.mxu0 %vm56_vm2, %v576_v44 }
  0x8e   :  { %562 = vmatmul.msk.f32.gmra.mxu0 %vm57_vm3, %v576_v44 }
  0x96   :  { %563 = vmatmul.msk.f32.gmra.mxu0 %vm58_vm4, %v576_v44 }
  0x9e   :  { %564 = vmatmul.msk.f32.gmra.mxu0 %vm59_vm5, %v576_v44  ;;  %v53_v56 = vpop.permute.xlu1 %52 }
  0x9f   :  { %vm61_vm7 = vcmp.eq.s32.totalorder %v843_v42, %v53_v56 }
  0xa1   :  { %v177_v52 = vpop.f32.mrf.mxu1 }
  0xa6   :  { %565 = vmatmul.msk.f32.gmra.mxu0 %vm60_vm6, %v576_v44 }
  0xae   :  { %566 = vmatmul.msk.f32.gmra.mxu0 %vm61_vm7, %v576_v44 }
  0xf3   :  { %v111_v53 = vpop.f32.mrf.mxu0 }
  0xf4   :  { %v880_v54 = vadd.f32 %v177_v52, %v111_v53 }
  0xf6   :  { %v181_v55 = vmax.f32 %v880_v54, 0.0 }
  0xf8   :  { %217 = vmatmul.f32.vlgmr.msra.gmra.mxu3 %v181_v55 }
  0xf9   :  { %365 = vmatpush.msra.mxu3 %v622_v5  ;;  %v485_v5 = vld [vmem:[%s982_s3 + $0x38] sm:$0xff] }
  0xfa   :  { %506 = vmatpush.msrb.mxu2 %v485_v5 }
  0xfb   :  { %366 = vmatpush.msra.mxu3 %v630_v7  ;;  %v114_v57 = vpop.f32.mrf.mxu0 }
  0xfc   :  { %507 = vmatpush.msrb.mxu2 %v484_v10 }
  0xfd   :  { %367 = vmatpush.msra.mxu3 %v640_v9 }
  0xfe   :  { %508 = vmatpush.msrb.mxu2 %v483_v11 }
  0xff   :  { %368 = vmatpush.msra.mxu3 %v657_v13  ;;  %v481_v13 = vld [vmem:[%s982_s3 + $0x18] sm:$0xff] }
 0x100   :  { %509 = vmatpush.msrb.mxu2 %v482_v12 }
 0x101   :  { %369 = vmatpush.msra.mxu3 %v671_v16  ;;  %v478_v16 = vld [vmem:[%s982_s3] sm:$0xff] }
 0x102   :  { %510 = vmatpush.msrb.mxu2 %v481_v13 }
 0x103   :  { %370 = vmatpush.msra.mxu3 %v680_v18  ;;  %v117_v6 = vpop.f32.mrf.mxu0 }
 0x104   :  { %511 = vmatpush.msrb.mxu2 %v480_v14 }
 0x105   :  { %371 = vmatpush.msra.mxu3 %v690_v20 }
 0x106   :  { %512 = vmatpush.msrb.mxu2 %v479_v15 }
 0x107   :  { %372 = vmatpush.msra.mxu3 %v704_v23 }
 0x108   :  { %513 = vmatpush.msrb.mxu2 %v478_v16 }
 0x109   :  { %373 = vmatpush.msra.mxu3 %v715_v25  ;;  %v573_v25 = vld [vmem:[%s983_s4] ss:$0 sm:$0xff] }
 0x10b   :  { %374 = vmatpush.msra.mxu3 %v725_v27  ;;  %v120_v17 = vpop.f32.mrf.mxu0 }
 0x10d   :  { %375 = vmatpush.msra.mxu3 %v736_v29 }
 0x10f   :  { %376 = vmatpush.msra.mxu3 %v747_v31 }
 0x111   :  { %377 = vmatpush.msra.mxu3 %v758_v33 }
 0x113   :  { %378 = vmatpush.msra.mxu3 %v769_v35  ;;  %v123_v21 = vpop.f32.mrf.mxu0 }
 0x115   :  { %379 = vmatpush.msra.mxu3 %v780_v37 }
 0x117   :  { %380 = vmatpush.msra.mxu3 %v799_v39 }
 0x11b   :  { %v126_v34 = vpop.f32.mrf.mxu0 }
 0x123   :  { %v129_v40 = vpop.f32.mrf.mxu0 }
 0x12b   :  { %v132_v41 = vpop.f32.mrf.mxu0 }
 0x17b   :  { %v218_v58 = vpop.f32.mrf.mxu3 }
 0x17c   :  { %v221_v59 = vadd.f32 %v218_v58, %v114_v57 }
 0x17e   :  { %v222_v60 = vmax.f32 %v221_v59, 0.0 }
 0x180   :  { %258 = vmatmul.f32.vlgmr.msrb.gmra.mxu3 %v222_v60 }
 0x203   :  { %v259_v7 = vpop.f32.mrf.mxu3 }
 0x204   :  { %v262_v8 = vadd.f32 %v259_v7, %v117_v6 }
 0x206   :  { %v263_v9 = vmax.f32 %v262_v8, 0.0 }
 0x208   :  { %299 = vmatmul.f32.vlgmr.msrb.gmra.mxu1 %v263_v9 }
 0x285   :  { %v300_v18 = vpop.f32.mrf.mxu1 }
 0x286   :  { %v303_v19 = vadd.f32 %v300_v18, %v120_v17 }
 0x288   :  { %v304_v20 = vmax.f32 %v303_v19, 0.0 }
 0x28a   :  { %340 = vmatmul.f32.vlgmr.msra.gmra.mxu2 %v304_v20 }
 0x292   :  { %514 = vmatmul.f32.vlgmr.msrb.gmra.mxu2 %v181_v55 }
 0x29a   :  { %517 = vmatmul.f32.gmra.mxu2 %v222_v60 }
 0x2a2   :  { %520 = vmatmul.f32.gmra.mxu2 %v263_v9 }
 0x2aa   :  { %523 = vmatmul.f32.gmra.mxu2 %v304_v20 }
 0x30d   :  { %v341_v22 = vpop.f32.mrf.mxu2 }
 0x30e   :  { %v344_v23 = vadd.f32 %v341_v22, %v123_v21 }
 0x310   :  { %v345_v24 = vmax.f32 %v344_v23, 0.0 }
 0x312   :  { %381 = vmatmul.f32.vlgmr.msra.gmra.mxu3 %v345_v24  ;;  %526 = vmatmul.f32.gmra.mxu2 %v345_v24 }
 0x315   :  { %v515_v26 = vpop.f32.mrf.mxu2 }
 0x316   :  { %v516_v27 = vadd.f32 %v573_v25, %v515_v26 }
 0x318   :  { %539 = vst [vmem:[%s984_s5] sm:$0xff] %v516_v27 }
 0x31d   :  { %v518_v28 = vpop.f32.mrf.mxu2 }
 0x31e   :  { %v519_v29 = vadd.f32 %v573_v25, %v518_v28 }
 0x320   :  { %540 = vst [vmem:[%s984_s5 + $0x8] sm:$0xff] %v519_v29 }
 0x325   :  { %v521_v30 = vpop.f32.mrf.mxu2 }
 0x326   :  { %v522_v31 = vadd.f32 %v573_v25, %v521_v30 }
 0x328   :  { %541 = vst [vmem:[%s984_s5 + $0x10] sm:$0xff] %v522_v31 }
 0x32d   :  { %v524_v32 = vpop.f32.mrf.mxu2 }
 0x32e   :  { %v525_v33 = vadd.f32 %v573_v25, %v524_v32 }
 0x330   :  { %542 = vst [vmem:[%s984_s5 + $0x18] sm:$0xff] %v525_v33 }
 0x395   :  { %v382_v35 = vpop.f32.mrf.mxu3  ;;  %v527_v36 = vpop.f32.mrf.mxu2 }
 0x396   :  { %v385_v37 = vadd.f32 %v382_v35, %v126_v34  ;;  %v528_v38 = vadd.f32 %v573_v25, %v527_v36 }
 0x398   :  { %v386_v39 = vmax.f32 %v385_v37, 0.0  ;;  %543 = vst [vmem:[%s984_s5 + $0x20] sm:$0xff] %v528_v38 }
 0x39a   :  { %422 = vmatmul.f32.vlgmr.msrb.gmra.mxu0 %v386_v39  ;;  %529 = vmatmul.f32.gmra.mxu2 %v386_v39 }
 0x417   :  { %v423_v42 = vpop.f32.mrf.mxu0 }
 0x418   :  { %v426_v43 = vadd.f32 %v423_v42, %v129_v40 }
 0x41a   :  { %v427_v44 = vmax.f32 %v426_v43, 0.0 }
 0x41c   :  { %463 = vmatmul.f32.vlgmr.msra.gmra.mxu1 %v427_v44  ;;  %532 = vmatmul.f32.gmra.mxu2 %v427_v44 }
 0x41d   :  { %v530_v45 = vpop.f32.mrf.mxu2 }
 0x41e   :  { %v531_v46 = vadd.f32 %v573_v25, %v530_v45 }
 0x420   :  { %544 = vst [vmem:[%s984_s5 + $0x28] sm:$0xff] %v531_v46 }
 0x499   :  { %v464_v47 = vpop.f32.mrf.mxu1 }
 0x49a   :  { %v467_v48 = vadd.f32 %v464_v47, %v132_v41 }
 0x49c   :  { %v468_v49 = vmax.f32 %v467_v48, 0.0 }
 0x49e   :  { %535 = vmatmul.f32.gmra.mxu2 %v468_v49 }
 0x49f   :  { %v533_v50 = vpop.f32.mrf.mxu2 }
 0x4a0   :  { %v534_v51 = vadd.f32 %v573_v25, %v533_v50 }
 0x4a2   :  { %545 = vst [vmem:[%s984_s5 + $0x30] sm:$0xff] %v534_v51 }
 0x521   :  { %v536_v52 = vpop.f32.mrf.mxu2 }
 0x522   :  { %v537_v53 = vadd.f32 %v573_v25, %v536_v52 }
 0x524   :  { %546 = vst [vmem:[%s984_s5 + $0x38] sm:$0xff] %v537_v53 }

</bundles_post_ra>
